<compile_context>
chip_gen: v6e
topology: v6e:2x2x1
jax: 0.10.0
libtpu: 0.0.40
codegen_flags: <defaults>
</compile_context>

<pallas_src>
import jax
import jax.numpy as jnp
from jax.experimental import pallas as pl
from jax.experimental.pallas import tpu as pltpu


def _round_up(x: int, m: int) -> int:
    return (x + m - 1) // m * m


def perceptron_kernel(x_ref, w_ref, b_ref, o_ref):
    # x_ref: (TB, D) VMEM tile (pipelined), w_ref: (1, D) VMEM (resident across grid),
    # b_ref: (1, 1) SMEM scalar, o_ref: (1, TB) lane-dense output row.
    logits = jax.lax.dot_general(
        w_ref[...],                       # (1, D)
        x_ref[...],                       # (TB, D)
        dimension_numbers=(((1,), (1,)), ((), ())),
        preferred_element_type=jnp.float32,
    )                                     # -> (1, TB), f32 accumulate on the MXU
    logits = logits + b_ref[0, 0]         # scalar bias from SMEM
    o_ref[...] = jax.nn.sigmoid(logits).astype(o_ref.dtype)


def perceptron_forward(x, w, b, *, block_batch=None):
    """sigmoid(x @ w + b) squeezed to (B,).

    x: (B, D) float32 or bfloat16
    w: (D, 1), (1, D) or (D,)   (nn.Linear weight in any orientation)
    b: scalar, (1,) or (1, 1)
    returns: (B,) float32
    """
    x = jnp.asarray(x)
    B, D = x.shape

    # Weight as a lane-dense (1, D) row, matching x's dtype for the MXU.
    # NOTE: if D == 1, (D, 1) and (1, D) are both (1, 1); the dispatch is ambiguous
    # but numerically identical, so it does not matter which branch is taken.
    w = jnp.asarray(w)
    if w.ndim == 1:
        w_row = w.reshape(1, D)
    elif w.shape == (D, 1):
        w_row = w.T
    elif w.shape == (1, D):
        w_row = w
    else:
        raise ValueError(f"bad weight shape {w.shape} for input_dim={D}")
    w_row = w_row.astype(x.dtype)

    # Bias as a (1, 1) float32 scalar destined for SMEM.
    b_smem = jnp.asarray(b, jnp.float32).reshape(1, 1)

    # ---- batch tile sizing: by VMEM bytes, lane-padding aware ----
    itemsize = x.dtype.itemsize
    row_vmem_bytes = _round_up(D, 128) * itemsize          # last dim lane-pads to 128
    if block_batch is None:
        target_buf_bytes = 6 * 1024 * 1024                 # per input buffer (x2 double-buffered)
        block_batch = max(128, target_buf_bytes // max(1, row_vmem_bytes))
    tb = max(128, _round_up(block_batch, 128))             # 128-aligned output lanes / bf16 granule
    tb = min(tb, _round_up(B, 128))                        # never larger than the rounded batch
    if B > 256:
        # Keep at least 2 grid steps so both v7x TensorCores get work under
        # dimension_semantics=("parallel",).
        tb = max(128, min(tb, _round_up((B + 1) // 2, 128)))

    num_tiles = pl.cdiv(B, tb)   # last tile may be ragged; Pallas masks it, no jnp.pad copy

    cost = pl.CostEstimate(
        flops=2 * B * D,
        transcendentals=B,                                  # one sigmoid (exp) per row
        bytes_accessed=B * D * itemsize + D * itemsize + B * 4,
    )

    out = pl.pallas_call(
        perceptron_kernel,
        out_shape=jax.ShapeDtypeStruct((num_tiles, tb), jnp.float32),
        grid_spec=pltpu.PrefetchScalarGridSpec(
            num_scalar_prefetch=0,
            grid=(num_tiles,),
            in_specs=[
                pl.BlockSpec((tb, D), lambda i: (i, 0)),            # x tile (pipelined)
                pl.BlockSpec((1, D), lambda i: (0, 0)),             # weight, VMEM-resident
                pl.BlockSpec(memory_space=pltpu.MemorySpace.SMEM),  # bias scalar in SMEM
            ],
            out_specs=pl.BlockSpec((1, tb), lambda i: (i, 0)),      # lane-dense output row
        ),
        compiler_params=pltpu.CompilerParams(
            dimension_semantics=("parallel",),      # shard batch tiles across TCs (v7x)
            vmem_limit_bytes=32 * 1024 * 1024,      # headroom on v5e; <= physical everywhere
        ),
        cost_estimate=cost,
    )(x, w_row, b_smem)

    # (num_tiles, tb) -> flat in original row order; drop the ragged-tile garbage tail.
    return out.reshape(num_tiles * tb)[:B]


if __name__ == "__main__":
    key = jax.random.PRNGKey(0)
    batch, input_dim = 30, 32

    kx, kw, kb = jax.random.split(key, 3)
    x = jax.random.normal(kx, (batch, input_dim), dtype=jnp.float32)

    # Deterministic init mimicking nn.Linear default: U(-1/sqrt(fan_in), 1/sqrt(fan_in))
    bound = 1.0 / float(input_dim) ** 0.5
    w = jax.random.uniform(kw, (input_dim, 1), jnp.float32, -bound, bound)
    b = jax.random.uniform(kb, (1,), jnp.float32, -bound, bound)

    # Small batch: single (ragged) tile.
    y = perceptron_forward(x, w, b)
    jax.block_until_ready(y)
    y_ref = jax.nn.sigmoid(x @ w + b).squeeze(-1)
    assert y.shape == (batch,), y.shape
    assert jnp.allclose(y, y_ref, atol=1e-5, rtol=1e-5), float(jnp.max(jnp.abs(y - y_ref)))

    # Larger batch with an explicit small tile: exercises a multi-step grid whose last
    # x block is ragged (300 = 2*128 + 44) — no padded copy of x is ever made.
    batch2 = 300
    x2 = jax.random.normal(kx, (batch2, input_dim), dtype=jnp.float32)
    y2 = perceptron_forward(x2, w, b, block_batch=128)
    jax.block_until_ready(y2)
    y2_ref = jax.nn.sigmoid(x2 @ w + b).squeeze(-1)
    assert y2.shape == (batch2,), y2.shape
    assert jnp.allclose(y2, y2_ref, atol=1e-5, rtol=1e-5), float(jnp.max(jnp.abs(y2 - y2_ref)))

    print("KERNEL_OK")
</pallas_src>

<mosaic_0001>
module attributes {stable_mosaic.version = 11 : i64} {
  func.func @perceptron_kernel(%arg0: i32, %arg1: memref<128x32xf32, #tpu.memory_space<vmem>>, %arg2: memref<1x32xf32, #tpu.memory_space<vmem>>, %arg3: memref<1x1xf32, #tpu.memory_space<smem>>, %arg4: memref<1x128xf32, #tpu.memory_space<vmem>>) attributes {dimension_semantics = [#tpu.dimension_semantics<parallel>], iteration_bounds = array<i64: 1>, scalar_prefetch = 0 : i64, scratch_operands = 0 : i64, tpu.core_type = #tpu.core_type<tc>, window_params = [{transform_indices = @transform_0, window_bounds = array<i64: 128, 32>}, {pipeline_mode = #tpu.pipeline_mode<synchronous>, transform_indices = @transform_1, window_bounds = array<i64: 1, 32>}, {transform_indices = @transform_2, window_bounds = array<i64: 1, 1>}, {transform_indices = @transform_3, window_bounds = array<i64: 1, 128>}]} {
    %c0 = arith.constant 0 : index
    %c0_0 = arith.constant 0 : index
    %0 = vector.load %arg2[%c0, %c0_0] : memref<1x32xf32, #tpu.memory_space<vmem>>, vector<1x32xf32>
    %c0_1 = arith.constant 0 : index
    %c0_2 = arith.constant 0 : index
    %1 = vector.load %arg1[%c0_1, %c0_2] : memref<128x32xf32, #tpu.memory_space<vmem>>, vector<128x32xf32>
    %cst = arith.constant dense<0.000000e+00> : vector<1x128xf32>
    %2 = tpu.matmul %0, %1, %cst {dimension_numbers = #tpu.dot_dimension_numbers<[1], [1], [0], [0], [0, 0, 1, 0], [], []>} : vector<1x32xf32>, vector<128x32xf32>, vector<1x128xf32> -> vector<1x128xf32>
    %c0_3 = arith.constant 0 : index
    %c0_4 = arith.constant 0 : index
    %3 = memref.load %arg3[%c0_3, %c0_4] : memref<1x1xf32, #tpu.memory_space<smem>>
    %4 = vector.broadcast %3 : f32 to vector<1x128xf32>
    %5 = arith.addf %2, %4 : vector<1x128xf32>
    %6 = arith.negf %5 : vector<1x128xf32>
    %7 = math.exp %6 : vector<1x128xf32>
    %cst_5 = arith.constant 1.000000e+00 : f32
    %8 = vector.broadcast %cst_5 : f32 to vector<1x128xf32>
    %9 = arith.addf %8, %7 : vector<1x128xf32>
    %10 = arith.divf %8, %9 : vector<1x128xf32>
    %c0_6 = arith.constant 0 : index
    %c0_7 = arith.constant 0 : index
    %11 = vector.load %arg4[%c0_6, %c0_7] : memref<1x128xf32, #tpu.memory_space<vmem>>, vector<1x128xf32>
    tpu.vector_store %arg4[%c0_6, %c0_7], %10 {strides = array<i32>} : memref<1x128xf32, #tpu.memory_space<vmem>>, vector<1x128xf32>,
    return
  }
  func.func @transform_0(%arg0: i32) -> (i32, i32) {
    %c0_i32 = arith.constant 0 : i32
    %c0_i32_0 = arith.constant 0 : i32
    return %arg0, %c0_i32 : i32, i32
  }
  func.func @transform_1(%arg0: i32) -> (i32, i32) {
    %c0_i32 = arith.constant 0 : i32
    %c0_i32_0 = arith.constant 0 : i32
    %c0_i32_1 = arith.constant 0 : i32
    return %c0_i32, %c0_i32_0 : i32, i32
  }
  func.func @transform_2(%arg0: i32) -> (i32, i32) {
    %c0_i32 = arith.constant 0 : i32
    %c0_i32_0 = arith.constant 0 : i32
    %c0_i32_1 = arith.constant 0 : i32
    return %c0_i32, %c0_i32_0 : i32, i32
  }
  func.func @transform_3(%arg0: i32) -> (i32, i32) {
    %c0_i32 = arith.constant 0 : i32
    %c0_i32_0 = arith.constant 0 : i32
    return %arg0, %c0_i32 : i32, i32
  }
}

</mosaic_0001>

<bundles_post_ra>
// kernel: tpu_custom_call.1
= control target key start
LH: loop header
LB: loop body
LE: loop exit
PB: predicated region body
PF: predicated region fallthrough
CT: control target
= control target key end

     0   :  { %9 = vsyncpa [#allocation4], 0  ;;  %s372_s0 = inlined_call_operand.hbm [shape: f32[30,32], index: 0, kind: input, shape index: {}]   ;;  %s373_s1 = inlined_call_operand.vmem [shape: f32[1,32], index: 1, kind: input, shape index: {}]   ;;  %s374_s2 = inlined_call_operand.<no memory space> [shape: f32[1,1], index: 2, kind: input, shape index: {}]   ;;  %s375_s3 = inlined_call_operand.hbm [shape: f32[1,128], index: 3, kind: output, shape index: {}]  }
   0x1   :  { %10 = vsyncpa [#allocation5], 0 }
   0x2   :  { %15 = vsyncadd [#allocation4], 1536  ;;  %s317_s12 = smov [#allocation3]  }
   0x3   :  { %s16_s13 = sshll.u32 %s317_s12, 4  ;;  %s17_s13 = int_to_ptr.vmem [resolvable:$true] %s16_s13 }
   0x4   :  { %s281_s14 = scalar_lea.vmem %s17_s13, 512  ;;  %s285_s15 = scalar_lea.vmem %s17_s13, 2048 }
   0x5   :  { %p282_p0 = scmp.ne.s32.totalorder %s17_s13, %s281_s14  ;;  %p286_p1 = scmp.lt.s32.totalorder %s17_s13, %s17_s13 }
   0x6   :  { %p287_p2 = scmp.lt.s32.totalorder %s285_s15, %s281_s14 }
   0x8   :  { %p288_p3 = por %p287_p2, %p286_p1 }
   0xa   :  { %p289_p4 = pnand %p288_p3, %p282_p0 }
   0xc   :  { %292 = shalt.err (!%p289_p4)
}
   0xd   :  { %s318_s16 = smov 128   ;;  %s319_s17 = smov 8  }
   0xe   :  { %22 = dma.hbm_to_vmem [thread:$0]  %s372_s0, 512, %s17_s13, [#allocation4], %s318_s16, %s318_s16, %s319_s17  }
   0xf   :  { %313 = dma.done.wait [#allocation4], 2048  }
  0x10   :  { %314 = vsyncadd [#allocation4], 4294965248  ;;  %v320_v0 = vmov 0.0   ;;  %vm321_vm0 = vmmov 0   ;;  %vm49_vm1 = vcmask 261120   ;;  %v46_v1 = vld [vmem:[#allocation3 + $0x78] sm:$0xff]  ;;  %v48_v18 = vstv %s374_s2 }
  0x11   :  { %228 = vmatprep.subr.mxu0 %v320_v0  ;;  %260 = vmatprep.mubr.msk.f32.mxu0 %vm321_vm0, %v320_v0  ;;  %v45_v2 = vld [vmem:[#allocation3 + $0x70] sm:$0xff]  ;;  %v44_v3 = vld [vmem:[#allocation3 + $0x68] sm:$0xff]  ;;  %v43_v4 = vld [vmem:[#allocation3 + $0x60] sm:$0xff]  ;;  %s322_s23 = smov [#allocation6]  }
  0x12   :  { %229 = vmatpush3.xpose.msk.msra.mxu0 %vm49_vm1, %v46_v1  ;;  %v42_v5 = vld [vmem:[#allocation3 + $0x58] sm:$0xff]  ;;  %v41_v6 = vld [vmem:[#allocation3 + $0x50] sm:$0xff]  ;;  %v40_v7 = vld [vmem:[#allocation3 + $0x48] sm:$0xff]  ;;  %s184_s24 = sshll.u32 %s322_s23, 4  ;;  %s185_s24 = int_to_ptr.vmem [resolvable:$true] %s184_s24 }
  0x13   :  { %230 = vmatprep.subr.mxu0 %v320_v0  ;;  %v39_v8 = vld [vmem:[#allocation3 + $0x40] sm:$0xff]  ;;  %v38_v9 = vld [vmem:[#allocation3 + $0x38] sm:$0xff]  ;;  %v37_v10 = vld [vmem:[#allocation3 + $0x30] sm:$0xff]  ;;  %s297_s25 = scalar_lea.vmem %s185_s24, 32  ;;  %p298_p6 = scmp.lt.s32.totalorder %s185_s24, %s185_s24 }
  0x14   :  { %v36_v11 = vld [vmem:[#allocation3 + $0x28] sm:$0xff]  ;;  %v35_v12 = vld [vmem:[#allocation3 + $0x20] sm:$0xff]  ;;  %v34_v13 = vld [vmem:[#allocation3 + $0x18] sm:$0xff] }
  0x15   :  { %v33_v14 = vld [vmem:[#allocation3 + $0x10] sm:$0xff]  ;;  %v32_v15 = vld [vmem:[#allocation3 + $0x8] sm:$0xff]  ;;  %v31_v16 = vld [vmem:[#allocation3] sm:$0xff] }
  0x16   :  { %231 = vmatpush3.xpose.msk.msra.mxu0 %vm49_vm1, %v45_v2  ;;  %v30_v17 = vld [vmem:[%s373_s1] sm:$0x1]  ;;  %s293_s1 = scalar_lea.vmem %s185_s24, 16 }
  0x17   :  { %232 = vmatprep.subr.mxu0 %v320_v0  ;;  %p294_p5 = scmp.ne.s32.totalorder %s185_s24, %s293_s1  ;;  %p299_p7 = scmp.lt.s32.totalorder %s297_s25, %s293_s1 }
  0x19   :  { %p300_p8 = por %p299_p7, %p298_p6 }
  0x1a   :  { %233 = vmatpush3.xpose.msk.msra.mxu0 %vm49_vm1, %v44_v3 }
  0x1b   :  { %234 = vmatprep.subr.mxu0 %v320_v0  ;;  %p301_p9 = pnand %p300_p8, %p294_p5 }
  0x1e   :  { %235 = vmatpush3.xpose.msk.msra.mxu0 %vm49_vm1, %v43_v4 }
  0x1f   :  { %236 = vmatprep.subr.mxu0 %v320_v0 }
  0x22   :  { %237 = vmatpush3.xpose.msk.msra.mxu0 %vm49_vm1, %v42_v5 }
  0x23   :  { %238 = vmatprep.subr.mxu0 %v320_v0 }
  0x26   :  { %239 = vmatpush3.xpose.msk.msra.mxu0 %vm49_vm1, %v41_v6 }
  0x27   :  { %240 = vmatprep.subr.mxu0 %v320_v0 }
  0x2a   :  { %241 = vmatpush3.xpose.msk.msra.mxu0 %vm49_vm1, %v40_v7 }
  0x2b   :  { %242 = vmatprep.subr.mxu0 %v320_v0 }
  0x2e   :  { %243 = vmatpush3.xpose.msk.msra.mxu0 %vm49_vm1, %v39_v8 }
  0x2f   :  { %244 = vmatprep.subr.mxu0 %v320_v0 }
  0x32   :  { %245 = vmatpush3.xpose.msk.msra.mxu0 %vm49_vm1, %v38_v9 }
  0x33   :  { %246 = vmatprep.subr.mxu0 %v320_v0 }
  0x36   :  { %247 = vmatpush3.xpose.msk.msra.mxu0 %vm49_vm1, %v37_v10 }
  0x37   :  { %248 = vmatprep.subr.mxu0 %v320_v0 }
  0x3a   :  { %249 = vmatpush3.xpose.msk.msra.mxu0 %vm49_vm1, %v36_v11 }
  0x3b   :  { %250 = vmatprep.subr.mxu0 %v320_v0 }
  0x3e   :  { %251 = vmatpush3.xpose.msk.msra.mxu0 %vm49_vm1, %v35_v12 }
  0x3f   :  { %252 = vmatprep.subr.mxu0 %v320_v0 }
  0x42   :  { %253 = vmatpush3.xpose.msk.msra.mxu0 %vm49_vm1, %v34_v13 }
  0x43   :  { %254 = vmatprep.subr.mxu0 %v320_v0 }
  0x46   :  { %255 = vmatpush3.xpose.msk.msra.mxu0 %vm49_vm1, %v33_v14 }
  0x47   :  { %256 = vmatprep.subr.mxu0 %v320_v0 }
  0x4a   :  { %257 = vmatpush3.xpose.msk.msra.mxu0 %vm49_vm1, %v32_v15 }
  0x4b   :  { %258 = vmatprep.subr.mxu0 %v320_v0 }
  0x4e   :  { %259 = vmatpush3.xpose.msk.msra.mxu0 %vm49_vm1, %v31_v16 }
  0x51   :  { %261 = vmatmul.mubr.msk.f32.vlgmr.msra.gmra.mxu0 %vm49_vm1, %v30_v17 }
 0x111   :  { %v167_v19 = vpop.f32.mrf.mxu0 }
 0x112   :  { %v168_v20 = vadd.f32 %v167_v19, %v48_v18 }
 0x113   :  { %v262_v21 = vpop.f32.mrf.mxu0 }
 0x114   :  { %v210_v22 = vmul.f32 -1.442695, %v168_v20 }
 0x116   :  { %269 = vpow2.f32 %v210_v22 }
 0x123   :  { %v270_v23 = vpop.eup %269 }
 0x124   :  { %v174_v24 = vadd.f32 1.0, %v270_v23 }
 0x126   :  { %271 = vrcp.f32 %v174_v24 }
 0x133   :  { %v272_v25 = vpop.eup %271 }
 0x134   :  { %177 = vst [vmem:[#allocation6] sm:$0x1] %v272_v25 }
 0x135   :  { %304 = shalt.err (!%p301_p9)
}
 0x136   :  { %187 = dma.vmem_to_hbm [thread:$0]  %s185_s24, 16, %s375_s3, [#allocation5]  }
 0x137   :  { %315 = dma.done.wait [#allocation5], 16  }
 0x138   :  { %316 = vsyncadd [#allocation5], 4294967280 }
 0x139   :  { %191 = vsyncpa [#allocation4], 1 }
 0x13a   :  { %192 = vsyncpa [#allocation5], 1 }

</bundles_post_ra>
